<compile_context>
chip_gen: v5e
topology: v5e:2x2
jax: 0.10.0
libtpu: 0.0.40
codegen_flags: <defaults>
</compile_context>

<pallas_src>
import math

import jax
import jax.numpy as jnp
from jax.experimental import pallas as pl
from jax.experimental.pallas import tpu as pltpu


def _leaky(x, slope=0.2):
    return jnp.where(x > 0, x, slope * x)


def res2block_kernel(x_ref, w1_ref, w2_ref, out_ref):
    # x_ref / out_ref: (Bt, H, L) with L = G*W*C lanes (multiple of 128 when possible)
    # w*_ref:          (3, L, L)  banded weights, block-diagonal over the G lane groups
    Bt, H, L = x_ref.shape
    M = Bt * H

    x_rows = x_ref[...].reshape(M, L)          # layout no-op: H % 8 == 0, L % 128 == 0

    # Row-position masks: after the sublane roll, zero the rows that would have
    # crossed an H-slab boundary (this is exactly the zero H-padding of the conv).
    ridx = jax.lax.broadcasted_iota(jnp.int32, (M, L), 0) % H
    not_first = ridx != 0          # rows with a valid h-1 neighbour
    not_last = ridx != (H - 1)     # rows with a valid h+1 neighbour

    def conv(rows, w_ref):
        # out[h] = x[h-1] @ W[0] + x[h] @ W[1] + x[h+1] @ W[2]   (zero-padded in H)
        # Matmul is linear, so shift the *results* by +/-1 row (pltpu.roll, XLU slot)
        # instead of materialising H-padded activation copies in VMEM.
        z0 = jnp.dot(rows, w_ref[0], preferred_element_type=jnp.float32)
        z1 = jnp.dot(rows, w_ref[1], preferred_element_type=jnp.float32)
        z2 = jnp.dot(rows, w_ref[2], preferred_element_type=jnp.float32)
        down = jnp.where(not_first, pltpu.roll(z0, shift=1, axis=0), 0.0)
        up = jnp.where(not_last, pltpu.roll(z2, shift=M - 1, axis=0), 0.0)
        return z1 + down + up

    y1 = _leaky(conv(x_rows, w1_ref))
    y2 = conv(y1, w2_ref)
    out_ref[...] = _leaky(y2 + x_rows).reshape(Bt, H, L)


def _band_weights(w, W, G):
    """(Cout, Cin, 1, 3, 3) -> (3, G*W*Cin, G*W*Cout) banded, block-diag over G groups.

    band[dy][xi*C+ci, xo*C+co] = w[co, ci, 0, dy, xi-xo+1] if |xi-xo| <= 1 else 0,
    so width taps + channel mixing fold into one matmul per dy; the G lane groups
    (independent depth slabs) are kept separate via a block-diagonal kron.
    """
    C = w.shape[1]
    eye_g = jnp.eye(G, dtype=jnp.float32)
    bands = []
    for dy in range(3):
        band = jnp.zeros((W * C, W * C), jnp.float32)
        for dx in range(3):
            wt = jnp.transpose(w[:, :, 0, dy, dx]).astype(jnp.float32)  # (Cin, Cout)
            shift = jnp.eye(W, k=-(dx - 1), dtype=jnp.float32)          # xi == xo + dx - 1
            band = band + jnp.kron(shift, wt)
        bands.append(jnp.kron(eye_g, band))
    return jnp.stack(bands)   # (3, G*W*C, G*W*C)


def _pick_g(B, WC, max_lanes=512):
    """Smallest pack factor G dividing B that makes the lane dim a multiple of 128."""
    if WC % 128 == 0:
        return 1
    for g in range(2, B + 1):
        if B % g == 0 and g * WC <= max_lanes and (g * WC) % 128 == 0:
            return g
    return 1


def _pick_bt(Bg, H, L):
    """Largest divisor of Bg within a generous VMEM budget; only split the grid
    into >=2 steps if each step still keeps the matmul M dimension >= 256
    (useful on v7x's 2 TCs; single-core v5e/v6e prefer grid=1)."""
    budget = 4 << 20  # bytes per (Bt, H, L) activation block, well under scoped VMEM
    divs = [d for d in range(1, Bg + 1) if Bg % d == 0 and d * H * L * 4 <= budget]
    best = divs[-1] if divs else 1
    split = [d for d in divs if Bg // d >= 2 and d * H >= 256]
    if split:
        best = split[-1]
    return best


@jax.jit
def res2block_pallas(x, w1, w2):
    """x: (N, C, D, H, W); w1, w2: (C, C, 1, 3, 3). Returns (N, C, D, H, W) float32."""
    x = x.astype(jnp.float32)
    N, C, D, H, W = x.shape
    B = N * D
    WC = W * C

    G = _pick_g(B, WC)
    Bg = B // G
    L = G * WC

    # NCDHW -> (Bg, H, G*W*C): channels minor, G depth-slabs packed into lanes.
    # TODO(synk): these wrapper transposes are extra HBM passes; an in-kernel
    # relayout from native NCDHW would remove them for very large inputs.
    xs = jnp.transpose(x, (0, 2, 3, 4, 1)).reshape(B, H, WC)
    xs = xs.reshape(Bg, G, H, WC).transpose(0, 2, 1, 3).reshape(Bg, H, L)

    w1b = _band_weights(w1, W, G)   # (3, L, L)
    w2b = _band_weights(w2, W, G)

    Bt = _pick_bt(Bg, H, L)

    out = pl.pallas_call(
        res2block_kernel,
        out_shape=jax.ShapeDtypeStruct((Bg, H, L), jnp.float32),
        grid_spec=pltpu.PrefetchScalarGridSpec(
            num_scalar_prefetch=0,
            grid=(Bg // Bt,),
            in_specs=[
                pl.BlockSpec((Bt, H, L), lambda b: (b, 0, 0)),
                pl.BlockSpec((3, L, L), lambda b: (0, 0, 0)),
                pl.BlockSpec((3, L, L), lambda b: (0, 0, 0)),
            ],
            out_specs=pl.BlockSpec((Bt, H, L), lambda b: (b, 0, 0)),
        ),
        compiler_params=pltpu.CompilerParams(
            dimension_semantics=("parallel",)),
    )(xs, w1b, w2b)

    # (Bg, H, G*W*C) -> (N, C, D, H, W)
    out = out.reshape(Bg, H, G, WC).transpose(0, 2, 1, 3).reshape(N, D, H, W, C)
    return jnp.transpose(out, (0, 4, 1, 2, 3))


def res2block_reference(x, w1, w2):
    """Pure-JAX reference matching the PyTorch module."""
    dn = ("NCDHW", "OIDHW", "NCDHW")
    pad = ((0, 0), (1, 1), (1, 1))
    y = jax.lax.conv_general_dilated(x, w1, (1, 1, 1), pad, dimension_numbers=dn)
    y = _leaky(y)
    y = jax.lax.conv_general_dilated(y, w2, (1, 1, 1), pad, dimension_numbers=dn)
    y = y + x
    return _leaky(y)


def init_params(key, channels):
    # PyTorch Conv3d default init: kaiming-uniform => U(-b, b), b = 1/sqrt(fan_in)
    fan_in = channels * 1 * 3 * 3
    bound = 1.0 / math.sqrt(fan_in)
    k1, k2 = jax.random.split(key)
    shape = (channels, channels, 1, 3, 3)
    w1 = jax.random.uniform(k1, shape, jnp.float32, -bound, bound)
    w2 = jax.random.uniform(k2, shape, jnp.float32, -bound, bound)
    return w1, w2


if __name__ == "__main__":
    key = jax.random.PRNGKey(0)
    kx, kw = jax.random.split(key)

    N, C, D, H, W = 2, 4, 3, 16, 16
    x = jax.random.normal(kx, (N, C, D, H, W), jnp.float32)
    w1, w2 = init_params(kw, C)

    out = jax.block_until_ready(res2block_pallas(x, w1, w2))
    ref = jax.block_until_ready(res2block_reference(x, w1, w2))

    assert out.shape == ref.shape, (out.shape, ref.shape)
    assert jnp.allclose(out, ref, atol=1e-4, rtol=1e-4), (
        float(jnp.max(jnp.abs(out - ref))))

    print("KERNEL_OK")
</pallas_src>

<mosaic_0001>
module attributes {stable_mosaic.version = 11 : i64} {
  func.func @res2block_kernel(%arg0: i32, %arg1: memref<3x16x128xf32, #tpu.memory_space<vmem>>, %arg2: memref<3x128x128xf32, #tpu.memory_space<vmem>>, %arg3: memref<3x128x128xf32, #tpu.memory_space<vmem>>, %arg4: memref<3x16x128xf32, #tpu.memory_space<vmem>>) attributes {dimension_semantics = [#tpu.dimension_semantics<parallel>], iteration_bounds = array<i64: 1>, scalar_prefetch = 0 : i64, scratch_operands = 0 : i64, tpu.core_type = #tpu.core_type<tc>, window_params = [{transform_indices = @transform_0, window_bounds = array<i64: 3, 16, 128>}, {pipeline_mode = #tpu.pipeline_mode<synchronous>, transform_indices = @transform_1, window_bounds = array<i64: 3, 128, 128>}, {pipeline_mode = #tpu.pipeline_mode<synchronous>, transform_indices = @transform_2, window_bounds = array<i64: 3, 128, 128>}, {transform_indices = @transform_3, window_bounds = array<i64: 3, 16, 128>}]} {
    %c0 = arith.constant 0 : index
    %c0_0 = arith.constant 0 : index
    %c0_1 = arith.constant 0 : index
    %0 = vector.load %arg1[%c0, %c0_0, %c0_1] : memref<3x16x128xf32, #tpu.memory_space<vmem>>, vector<3x16x128xf32>
    %1 = vector.shape_cast %0 : vector<3x16x128xf32> to vector<48x128xf32>
    %2 = tpu.iota {dimensions = array<i32: 0>} : vector<48x128xi32>
    %c16_i32 = arith.constant 16 : i32
    %c0_i32 = arith.constant 0 : i32
    %3 = arith.cmpi eq, %c16_i32, %c0_i32 : i32
    %c1_i32 = arith.constant 1 : i32
    %4 = arith.select %3, %c1_i32, %c16_i32 : i32
    %5 = vector.broadcast %4 : i32 to vector<48x128xi32>
    %6 = arith.remsi %2, %5 : vector<48x128xi32>
    %c0_i32_2 = arith.constant 0 : i32
    %7 = vector.broadcast %c0_i32_2 : i32 to vector<48x128xi32>
    %8 = arith.cmpi ne, %6, %7 : vector<48x128xi32>
    %c0_i32_3 = arith.constant 0 : i32
    %9 = vector.broadcast %c0_i32_3 : i32 to vector<48x128xi32>
    %10 = arith.cmpi slt, %6, %9 : vector<48x128xi32>
    %c0_i32_4 = arith.constant 0 : i32
    %11 = arith.cmpi slt, %4, %c0_i32_4 : i32
    %12 = vector.broadcast %11 : i1 to vector<48x128xi1>
    %13 = vector.broadcast %12 : vector<48x128xi1> to vector<48x128xi1>
    %14 = arith.xori %10, %13 : vector<48x128xi1>
    %15 = arith.andi %14, %8 : vector<48x128xi1>
    %16 = vector.broadcast %4 : i32 to vector<48x128xi32>
    %17 = arith.addi %6, %16 : vector<48x128xi32>
    %18 = arith.select %15, %17, %6 : vector<48x128xi1>, vector<48x128xi32>
    %c0_i32_5 = arith.constant 0 : i32
    %19 = vector.broadcast %c0_i32_5 : i32 to vector<48x128xi32>
    %20 = arith.cmpi ne, %18, %19 : vector<48x128xi32>
    %c15_i32 = arith.constant 15 : i32
    %21 = vector.broadcast %c15_i32 : i32 to vector<48x128xi32>
    %22 = arith.cmpi ne, %18, %21 : vector<48x128xi32>
    %c0_6 = arith.constant 0 : index
    %c0_7 = arith.constant 0 : index
    %c0_8 = arith.constant 0 : index
    %23 = vector.load %arg2[%c0_6, %c0_7, %c0_8] : memref<3x128x128xf32, #tpu.memory_space<vmem>>, vector<1x128x128xf32>
    %24 = vector.shape_cast %23 : vector<1x128x128xf32> to vector<128x128xf32>
    %cst = arith.constant dense<0.000000e+00> : vector<48x128xf32>
    %25 = tpu.matmul %1, %24, %cst {dimension_numbers = #tpu.dot_dimension_numbers<[1], [0], [0], [1], [0, 0, 1, 1], [], []>} : vector<48x128xf32>, vector<128x128xf32>, vector<48x128xf32> -> vector<48x128xf32>
    %c1 = arith.constant 1 : index
    %c0_9 = arith.constant 0 : index
    %c0_10 = arith.constant 0 : index
    %26 = vector.load %arg2[%c1, %c0_9, %c0_10] : memref<3x128x128xf32, #tpu.memory_space<vmem>>, vector<1x128x128xf32>
    %27 = vector.shape_cast %26 : vector<1x128x128xf32> to vector<128x128xf32>
    %cst_11 = arith.constant dense<0.000000e+00> : vector<48x128xf32>
    %28 = tpu.matmul %1, %27, %cst_11 {dimension_numbers = #tpu.dot_dimension_numbers<[1], [0], [0], [1], [0, 0, 1, 1], [], []>} : vector<48x128xf32>, vector<128x128xf32>, vector<48x128xf32> -> vector<48x128xf32>
    %c2 = arith.constant 2 : index
    %c0_12 = arith.constant 0 : index
    %c0_13 = arith.constant 0 : index
    %29 = vector.load %arg2[%c2, %c0_12, %c0_13] : memref<3x128x128xf32, #tpu.memory_space<vmem>>, vector<1x128x128xf32>
    %30 = vector.shape_cast %29 : vector<1x128x128xf32> to vector<128x128xf32>
    %cst_14 = arith.constant dense<0.000000e+00> : vector<48x128xf32>
    %31 = tpu.matmul %1, %30, %cst_14 {dimension_numbers = #tpu.dot_dimension_numbers<[1], [0], [0], [1], [0, 0, 1, 1], [], []>} : vector<48x128xf32>, vector<128x128xf32>, vector<48x128xf32> -> vector<48x128xf32>
    %c1_i32_15 = arith.constant 1 : i32
    %32 = tpu.dynamic_rotate %25 by %c1_i32_15 dim 0 : vector<48x128xf32>, i32 -> vector<48x128xf32>
    %cst_16 = arith.constant 0.000000e+00 : f32
    %33 = vector.broadcast %cst_16 : f32 to vector<48x128xf32>
    %34 = arith.select %20, %32, %33 : vector<48x128xi1>, vector<48x128xf32>
    %c47_i32 = arith.constant 47 : i32
    %35 = tpu.dynamic_rotate %31 by %c47_i32 dim 0 : vector<48x128xf32>, i32 -> vector<48x128xf32>
    %cst_17 = arith.constant 0.000000e+00 : f32
    %36 = vector.broadcast %cst_17 : f32 to vector<48x128xf32>
    %37 = arith.select %22, %35, %36 : vector<48x128xi1>, vector<48x128xf32>
    %38 = arith.addf %28, %34 : vector<48x128xf32>
    %39 = arith.addf %38, %37 : vector<48x128xf32>
    %cst_18 = arith.constant 0.000000e+00 : f32
    %40 = vector.broadcast %cst_18 : f32 to vector<48x128xf32>
    %41 = arith.cmpf ogt, %39, %40 : vector<48x128xf32>
    %cst_19 = arith.constant 2.000000e-01 : f32
    %42 = vector.broadcast %cst_19 : f32 to vector<48x128xf32>
    %43 = arith.mulf %42, %39 : vector<48x128xf32>
    %44 = arith.select %41, %39, %43 : vector<48x128xi1>, vector<48x128xf32>
    %c0_20 = arith.constant 0 : index
    %c0_21 = arith.constant 0 : index
    %c0_22 = arith.constant 0 : index
    %45 = vector.load %arg3[%c0_20, %c0_21, %c0_22] : memref<3x128x128xf32, #tpu.memory_space<vmem>>, vector<1x128x128xf32>
    %46 = vector.shape_cast %45 : vector<1x128x128xf32> to vector<128x128xf32>
    %cst_23 = arith.constant dense<0.000000e+00> : vector<48x128xf32>
    %47 = tpu.matmul %44, %46, %cst_23 {dimension_numbers = #tpu.dot_dimension_numbers<[1], [0], [0], [1], [0, 0, 1, 1], [], []>} : vector<48x128xf32>, vector<128x128xf32>, vector<48x128xf32> -> vector<48x128xf32>
    %c1_24 = arith.constant 1 : index
    %c0_25 = arith.constant 0 : index
    %c0_26 = arith.constant 0 : index
    %48 = vector.load %arg3[%c1_24, %c0_25, %c0_26] : memref<3x128x128xf32, #tpu.memory_space<vmem>>, vector<1x128x128xf32>
    %49 = vector.shape_cast %48 : vector<1x128x128xf32> to vector<128x128xf32>
    %cst_27 = arith.constant dense<0.000000e+00> : vector<48x128xf32>
    %50 = tpu.matmul %44, %49, %cst_27 {dimension_numbers = #tpu.dot_dimension_numbers<[1], [0], [0], [1], [0, 0, 1, 1], [], []>} : vector<48x128xf32>, vector<128x128xf32>, vector<48x128xf32> -> vector<48x128xf32>
    %c2_28 = arith.constant 2 : index
    %c0_29 = arith.constant 0 : index
    %c0_30 = arith.constant 0 : index
    %51 = vector.load %arg3[%c2_28, %c0_29, %c0_30] : memref<3x128x128xf32, #tpu.memory_space<vmem>>, vector<1x128x128xf32>
    %52 = vector.shape_cast %51 : vector<1x128x128xf32> to vector<128x128xf32>
    %cst_31 = arith.constant dense<0.000000e+00> : vector<48x128xf32>
    %53 = tpu.matmul %44, %52, %cst_31 {dimension_numbers = #tpu.dot_dimension_numbers<[1], [0], [0], [1], [0, 0, 1, 1], [], []>} : vector<48x128xf32>, vector<128x128xf32>, vector<48x128xf32> -> vector<48x128xf32>
    %c1_i32_32 = arith.constant 1 : i32
    %54 = tpu.dynamic_rotate %47 by %c1_i32_32 dim 0 : vector<48x128xf32>, i32 -> vector<48x128xf32>
    %cst_33 = arith.constant 0.000000e+00 : f32
    %55 = vector.broadcast %cst_33 : f32 to vector<48x128xf32>
    %56 = arith.select %20, %54, %55 : vector<48x128xi1>, vector<48x128xf32>
    %c47_i32_34 = arith.constant 47 : i32
    %57 = tpu.dynamic_rotate %53 by %c47_i32_34 dim 0 : vector<48x128xf32>, i32 -> vector<48x128xf32>
    %cst_35 = arith.constant 0.000000e+00 : f32
    %58 = vector.broadcast %cst_35 : f32 to vector<48x128xf32>
    %59 = arith.select %22, %57, %58 : vector<48x128xi1>, vector<48x128xf32>
    %60 = arith.addf %50, %56 : vector<48x128xf32>
    %61 = arith.addf %60, %59 : vector<48x128xf32>
    %62 = arith.addf %61, %1 : vector<48x128xf32>
    %cst_36 = arith.constant 0.000000e+00 : f32
    %63 = vector.broadcast %cst_36 : f32 to vector<48x128xf32>
    %64 = arith.cmpf ogt, %62, %63 : vector<48x128xf32>
    %cst_37 = arith.constant 2.000000e-01 : f32
    %65 = vector.broadcast %cst_37 : f32 to vector<48x128xf32>
    %66 = arith.mulf %65, %62 : vector<48x128xf32>
    %67 = arith.select %64, %62, %66 : vector<48x128xi1>, vector<48x128xf32>
    %68 = vector.shape_cast %67 : vector<48x128xf32> to vector<3x16x128xf32>
    %c0_38 = arith.constant 0 : index
    %c0_39 = arith.constant 0 : index
    %c0_40 = arith.constant 0 : index
    %69 = vector.load %arg4[%c0_38, %c0_39, %c0_40] : memref<3x16x128xf32, #tpu.memory_space<vmem>>, vector<3x16x128xf32>
    tpu.vector_store %arg4[%c0_38, %c0_39, %c0_40], %68 {strides = array<i32>} : memref<3x16x128xf32, #tpu.memory_space<vmem>>, vector<3x16x128xf32>,
    return
  }
  func.func @transform_0(%arg0: i32) -> (i32, i32, i32) {
    %c0_i32 = arith.constant 0 : i32
    %c0_i32_0 = arith.constant 0 : i32
    %c0_i32_1 = arith.constant 0 : i32
    return %arg0, %c0_i32, %c0_i32_0 : i32, i32, i32
  }
  func.func @transform_1(%arg0: i32) -> (i32, i32, i32) {
    %c0_i32 = arith.constant 0 : i32
    %c0_i32_0 = arith.constant 0 : i32
    %c0_i32_1 = arith.constant 0 : i32
    %c0_i32_2 = arith.constant 0 : i32
    return %c0_i32, %c0_i32_0, %c0_i32_1 : i32, i32, i32
  }
  func.func @transform_2(%arg0: i32) -> (i32, i32, i32) {
    %c0_i32 = arith.constant 0 : i32
    %c0_i32_0 = arith.constant 0 : i32
    %c0_i32_1 = arith.constant 0 : i32
    %c0_i32_2 = arith.constant 0 : i32
    return %c0_i32, %c0_i32_0, %c0_i32_1 : i32, i32, i32
  }
  func.func @transform_3(%arg0: i32) -> (i32, i32, i32) {
    %c0_i32 = arith.constant 0 : i32
    %c0_i32_0 = arith.constant 0 : i32
    %c0_i32_1 = arith.constant 0 : i32
    return %arg0, %c0_i32, %c0_i32_0 : i32, i32, i32
  }
}

</mosaic_0001>

<bundles_post_ra>
// kernel: res2block_pallas.1
= control target key start
LH: loop header
LB: loop body
LE: loop exit
PB: predicated region body
PF: predicated region fallthrough
CT: control target
= control target key end

     0   :  { %s1251_s1 = inlined_call_operand.vmem [shape: f32[3,128,128], index: 1, kind: input, shape index: {}]   ;;  %s1252_s0 = inlined_call_operand.vmem [shape: f32[3,16,128], index: 0, kind: input, shape index: {}]   ;;  %s1253_s2 = inlined_call_operand.vmem [shape: f32[3,128,128], index: 2, kind: input, shape index: {}]   ;;  %s1254_s3 = inlined_call_operand.vmem [shape: f32[3,16,128], index: 3, kind: output, shape index: {}]  }
   0x1   :  { %v126_v0 = vld [vmem:[%s1251_s1 + $0x78] sm:$0xff]  ;;  %v125_v3 = vld [vmem:[%s1251_s1 + $0x70] sm:$0xff]  ;;  %v124_v6 = vld [vmem:[%s1251_s1 + $0x68] sm:$0xff] }
   0x2   :  { %v590_v1 = vld [vmem:[%s1251_s1 + $0x178] sm:$0xff]  ;;  %127 = vmatpush.msra.mxu0 %v126_v0  ;;  %v589_v4 = vld [vmem:[%s1251_s1 + $0x170] sm:$0xff]  ;;  %v588_v7 = vld [vmem:[%s1251_s1 + $0x168] sm:$0xff] }
   0x3   :  { %v574_v2 = vld [vmem:[%s1251_s1 + $0xf8] sm:$0xff]  ;;  %196 = vmatpush.msra.mxu1 %v590_v1  ;;  %v573_v5 = vld [vmem:[%s1251_s1 + $0xf0] sm:$0xff]  ;;  %v572_v8 = vld [vmem:[%s1251_s1 + $0xe8] sm:$0xff] }
   0x4   :  { %269 = vmatpush.msra.mxu2 %v574_v2  ;;  %128 = vmatpush.msra.mxu0 %v125_v3  ;;  %v123_v9 = vld [vmem:[%s1251_s1 + $0x60] sm:$0xff]  ;;  %v122_v12 = vld [vmem:[%s1251_s1 + $0x58] sm:$0xff]  ;;  %v121_v15 = vld [vmem:[%s1251_s1 + $0x50] sm:$0xff] }
   0x5   :  { %197 = vmatpush.msra.mxu1 %v589_v4  ;;  %v587_v10 = vld [vmem:[%s1251_s1 + $0x160] sm:$0xff]  ;;  %v586_v13 = vld [vmem:[%s1251_s1 + $0x158] sm:$0xff]  ;;  %v585_v16 = vld [vmem:[%s1251_s1 + $0x150] sm:$0xff] }
   0x6   :  { %270 = vmatpush.msra.mxu2 %v573_v5  ;;  %129 = vmatpush.msra.mxu0 %v124_v6  ;;  %v571_v11 = vld [vmem:[%s1251_s1 + $0xe0] sm:$0xff]  ;;  %v570_v14 = vld [vmem:[%s1251_s1 + $0xd8] sm:$0xff]  ;;  %v569_v17 = vld [vmem:[%s1251_s1 + $0xd0] sm:$0xff] }
   0x7   :  { %198 = vmatpush.msra.mxu1 %v588_v7  ;;  %v120_v18 = vld [vmem:[%s1251_s1 + $0x48] sm:$0xff]  ;;  %v119_v21 = vld [vmem:[%s1251_s1 + $0x40] sm:$0xff]  ;;  %v118_v24 = vld [vmem:[%s1251_s1 + $0x38] sm:$0xff] }
   0x8   :  { %271 = vmatpush.msra.mxu2 %v572_v8  ;;  %130 = vmatpush.msra.mxu0 %v123_v9  ;;  %v584_v19 = vld [vmem:[%s1251_s1 + $0x148] sm:$0xff]  ;;  %v583_v22 = vld [vmem:[%s1251_s1 + $0x140] sm:$0xff]  ;;  %v582_v25 = vld [vmem:[%s1251_s1 + $0x138] sm:$0xff] }
   0x9   :  { %199 = vmatpush.msra.mxu1 %v587_v10  ;;  %v568_v20 = vld [vmem:[%s1251_s1 + $0xc8] sm:$0xff]  ;;  %v567_v23 = vld [vmem:[%s1251_s1 + $0xc0] sm:$0xff]  ;;  %v566_v26 = vld [vmem:[%s1251_s1 + $0xb8] sm:$0xff] }
   0xa   :  { %272 = vmatpush.msra.mxu2 %v571_v11  ;;  %131 = vmatpush.msra.mxu0 %v122_v12  ;;  %v117_v27 = vld [vmem:[%s1251_s1 + $0x30] sm:$0xff]  ;;  %v116_v30 = vld [vmem:[%s1251_s1 + $0x28] sm:$0xff]  ;;  %v115_v33 = vld [vmem:[%s1251_s1 + $0x20] sm:$0xff] }
   0xb   :  { %200 = vmatpush.msra.mxu1 %v586_v13  ;;  %v581_v28 = vld [vmem:[%s1251_s1 + $0x130] sm:$0xff]  ;;  %v580_v31 = vld [vmem:[%s1251_s1 + $0x128] sm:$0xff]  ;;  %v579_v34 = vld [vmem:[%s1251_s1 + $0x120] sm:$0xff] }
   0xc   :  { %273 = vmatpush.msra.mxu2 %v570_v14  ;;  %132 = vmatpush.msra.mxu0 %v121_v15  ;;  %v565_v29 = vld [vmem:[%s1251_s1 + $0xb0] sm:$0xff]  ;;  %v564_v32 = vld [vmem:[%s1251_s1 + $0xa8] sm:$0xff]  ;;  %v563_v35 = vld [vmem:[%s1251_s1 + $0xa0] sm:$0xff] }
   0xd   :  { %201 = vmatpush.msra.mxu1 %v585_v16  ;;  %v114_v36 = vld [vmem:[%s1251_s1 + $0x18] sm:$0xff]  ;;  %v113_v39 = vld [vmem:[%s1251_s1 + $0x10] sm:$0xff]  ;;  %v112_v42 = vld [vmem:[%s1251_s1 + $0x8] sm:$0xff] }
   0xe   :  { %274 = vmatpush.msra.mxu2 %v569_v17  ;;  %133 = vmatpush.msra.mxu0 %v120_v18  ;;  %v578_v37 = vld [vmem:[%s1251_s1 + $0x118] sm:$0xff]  ;;  %v577_v40 = vld [vmem:[%s1251_s1 + $0x110] sm:$0xff]  ;;  %v576_v43 = vld [vmem:[%s1251_s1 + $0x108] sm:$0xff] }
   0xf   :  { %202 = vmatpush.msra.mxu1 %v584_v19  ;;  %v562_v38 = vld [vmem:[%s1251_s1 + $0x98] sm:$0xff]  ;;  %v561_v41 = vld [vmem:[%s1251_s1 + $0x90] sm:$0xff]  ;;  %v560_v44 = vld [vmem:[%s1251_s1 + $0x88] sm:$0xff] }
  0x10   :  { %275 = vmatpush.msra.mxu2 %v568_v20  ;;  %134 = vmatpush.msra.mxu0 %v119_v21  ;;  %v111_v45 = vld [vmem:[%s1251_s1] sm:$0xff]  ;;  %v830_v49 = vld [vmem:[%s1252_s0 + $0x8] sm:$0xff]  ;;  %v838_v50 = vld [vmem:[%s1252_s0 + $0x10] sm:$0xff] }
  0x11   :  { %203 = vmatpush.msra.mxu1 %v583_v22  ;;  %v575_v46 = vld [vmem:[%s1251_s1 + $0x100] sm:$0xff]  ;;  %v846_v51 = vld [vmem:[%s1252_s0 + $0x18] sm:$0xff]  ;;  %v862_v53 = vld [vmem:[%s1252_s0 + $0x28] sm:$0xff] }
  0x12   :  { %276 = vmatpush.msra.mxu2 %v567_v23  ;;  %135 = vmatpush.msra.mxu0 %v118_v24  ;;  %v559_v47 = vld [vmem:[%s1251_s1 + $0x80] sm:$0xff]  ;;  %v622_v54 = vld [vmem:[%s1253_s2 + $0x178] sm:$0xff]  ;;  %v621_v55 = vld [vmem:[%s1253_s2 + $0x170] sm:$0xff] }
  0x13   :  { %204 = vmatpush.msra.mxu1 %v582_v25  ;;  %v822_v48 = vld [vmem:[%s1252_s0] sm:$0xff]  ;;  %v620_v56 = vld [vmem:[%s1253_s2 + $0x168] sm:$0xff]  ;;  %v618_v58 = vld [vmem:[%s1253_s2 + $0x158] sm:$0xff] }
  0x14   :  { %277 = vmatpush.msra.mxu2 %v566_v26  ;;  %136 = vmatpush.msra.mxu0 %v117_v27  ;;  %v854_v52 = vld [vmem:[%s1252_s0 + $0x20] sm:$0xff]  ;;  %v343_v59 = vld [vmem:[%s1253_s2 + $0x78] sm:$0xff]  ;;  %v617_v60 = vld [vmem:[%s1253_s2 + $0x150] sm:$0xff] }
  0x15   :  { %205 = vmatpush.msra.mxu1 %v581_v28  ;;  %v619_v57 = vld [vmem:[%s1253_s2 + $0x160] sm:$0xff]  ;;  %v891_v61 = vld [vmem:[%s1253_s2 + $0xf8] sm:$0xff]  ;;  %344 = vmatpush.msra.mxu3 %v343_v59  ;;  %v342_v62 = vld [vmem:[%s1253_s2 + $0x70] sm:$0xff] }
  0x16   :  { %278 = vmatpush.msra.mxu2 %v565_v29  ;;  %137 = vmatpush.msra.mxu0 %v116_v30  ;;  %v616_v63 = vld [vmem:[%s1253_s2 + $0x148] sm:$0xff]  ;;  %v903_v0 = vld [vmem:[%s1253_s2 + $0xf0] sm:$0xff]  ;;  %v615_v2 = vld [vmem:[%s1253_s2 + $0x140] sm:$0xff] }
  0x17   :  { %206 = vmatpush.msra.mxu1 %v580_v31  ;;  %345 = vmatpush.msra.mxu3 %v342_v62  ;;  %v341_v1 = vld [vmem:[%s1253_s2 + $0x68] sm:$0xff]  ;;  %v340_v4 = vld [vmem:[%s1253_s2 + $0x60] sm:$0xff]  ;;  %v614_v5 = vld [vmem:[%s1253_s2 + $0x138] sm:$0xff] }
  0x18   :  { %279 = vmatpush.msra.mxu2 %v564_v32  ;;  %138 = vmatpush.msra.mxu0 %v115_v33  ;;  %v915_v3 = vld [vmem:[%s1253_s2 + $0xe8] sm:$0xff]  ;;  %v927_v6 = vld [vmem:[%s1253_s2 + $0xe0] sm:$0xff]  ;;  %v339_v7 = vld [vmem:[%s1253_s2 + $0x58] sm:$0xff] }
  0x19   :  { %207 = vmatpush.msra.mxu1 %v579_v34  ;;  %346 = vmatpush.msra.mxu3 %v341_v1  ;;  %v613_v8 = vld [vmem:[%s1253_s2 + $0x130] sm:$0xff]  ;;  %v939_v9 = vld [vmem:[%s1253_s2 + $0xd8] sm:$0xff]  ;;  %v612_v11 = vld [vmem:[%s1253_s2 + $0x128] sm:$0xff] }
  0x1a   :  { %280 = vmatpush.msra.mxu2 %v563_v35  ;;  %139 = vmatpush.msra.mxu0 %v114_v36  ;;  %v338_v10 = vld [vmem:[%s1253_s2 + $0x50] sm:$0xff]  ;;  %v337_v15 = vld [vmem:[%s1253_s2 + $0x48] sm:$0xff]  ;;  %v611_v16 = vld [vmem:[%s1253_s2 + $0x120] sm:$0xff] }
  0x1b   :  { %208 = vmatpush.msra.mxu1 %v578_v37  ;;  %347 = vmatpush.msra.mxu3 %v340_v4  ;;  %v951_v12 = vld [vmem:[%s1253_s2 + $0xd0] sm:$0xff]  ;;  %v967_v17 = vld [vmem:[%s1253_s2 + $0xc8] sm:$0xff]  ;;  %v336_v18 = vld [vmem:[%s1253_s2 + $0x40] sm:$0xff] }
  0x1c   :  { %281 = vmatpush.msra.mxu2 %v562_v38  ;;  %140 = vmatpush.msra.mxu0 %v113_v39  ;;  %v610_v19 = vld [vmem:[%s1253_s2 + $0x118] sm:$0xff]  ;;  %v979_v20 = vld [vmem:[%s1253_s2 + $0xc0] sm:$0xff]  ;;  %v609_v22 = vld [vmem:[%s1253_s2 + $0x110] sm:$0xff] }
  0x1d   :  { %209 = vmatpush.msra.mxu1 %v577_v40  ;;  %348 = vmatpush.msra.mxu3 %v339_v7  ;;  %v335_v21 = vld [vmem:[%s1253_s2 + $0x38] sm:$0xff]  ;;  %v334_v25 = vld [vmem:[%s1253_s2 + $0x30] sm:$0xff]  ;;  %v608_v26 = vld [vmem:[%s1253_s2 + $0x108] sm:$0xff] }
  0x1e   :  { %282 = vmatpush.msra.mxu2 %v561_v41  ;;  %141 = vmatpush.msra.mxu0 %v112_v42  ;;  %v991_v23 = vld [vmem:[%s1253_s2 + $0xb8] sm:$0xff]  ;;  %v1005_v27 = vld [vmem:[%s1253_s2 + $0xb0] sm:$0xff]  ;;  %v333_v30 = vld [vmem:[%s1253_s2 + $0x28] sm:$0xff] }
  0x1f   :  { %210 = vmatpush.msra.mxu1 %v576_v43  ;;  %349 = vmatpush.msra.mxu3 %v338_v10  ;;  %v607_v31 = vld [vmem:[%s1253_s2 + $0x100] sm:$0xff]  ;;  %v1021_v32 = vld [vmem:[%s1253_s2 + $0xa8] sm:$0xff]  ;;  %v331_v35 = vld [vmem:[%s1253_s2 + $0x18] sm:$0xff] }
  0x20   :  { %283 = vmatpush.msra.mxu2 %v560_v44  ;;  %142 = vmatpush.msra.mxu0 %v111_v45  ;;  %v332_v33 = vld [vmem:[%s1253_s2 + $0x20] sm:$0xff]  ;;  %v1039_v36 = vld [vmem:[%s1253_s2 + $0x98] sm:$0xff]  ;;  %v330_v38 = vld [vmem:[%s1253_s2 + $0x10] sm:$0xff] }
  0x21   :  { %211 = vmatpush.msra.mxu1 %v575_v46  ;;  %143 = vmatmul.f32.vlgmr.msra.gmra.mxu0 %v822_v48  ;;  %v1030_v34 = vld [vmem:[%s1253_s2 + $0xa0] sm:$0xff]  ;;  %v1050_v39 = vld [vmem:[%s1253_s2 + $0x90] sm:$0xff]  ;;  %v329_v42 = vld [vmem:[%s1253_s2 + $0x8] sm:$0xff]  ;;  %v20_v46 = vlaneseq }
  0x22   :  { %284 = vmatpush.msra.mxu2 %v559_v47  ;;  %212 = vmatmul.f32.vlgmr.msra.gmra.mxu1 %v822_v48  ;;  %v1063_v43 = vld [vmem:[%s1253_s2 + $0x88] sm:$0xff]  ;;  %v328_v44 = vld [vmem:[%s1253_s2] sm:$0xff] }
  0x23   :  { %285 = vmatmul.f32.vlgmr.msra.gmra.mxu2 %v822_v48  ;;  %413 = vmatpush.msrb.mxu0 %v622_v54  ;;  %v1072_v45 = vld [vmem:[%s1253_s2 + $0x80] sm:$0xff] }
  0x24   :  { %623 = vmatpush.msrb.mxu2 %v622_v54  ;;  %484 = vmatpush.msrb.mxu1 %v891_v61  ;;  %v1079_v54 = vshrl.u32 %v20_v46, 7 }
  0x25   :  { %414 = vmatpush.msrb.mxu0 %v621_v55  ;;  %350 = vmatpush.msra.mxu3 %v337_v15 }
  0x26   :  { %624 = vmatpush.msrb.mxu2 %v621_v55  ;;  %485 = vmatpush.msrb.mxu1 %v903_v0  ;;  %vm256_vm0 = vcmp.lt.s32.totalorder %v1079_v54, 7  ;;  %vm237_vm1 = vcmp.lt.s32.totalorder %v1079_v54, 1  ;;  %v22_v4 = vadd.s32 8, %v1079_v54  ;;  %v26_v15 = vadd.s32 40, %v1079_v54 }
  0x27   :  { %415 = vmatpush.msrb.mxu0 %v620_v56  ;;  %351 = vmatpush.msra.mxu3 %v336_v18 }
  0x28   :  { %625 = vmatpush.msrb.mxu2 %v620_v56  ;;  %486 = vmatpush.msrb.mxu1 %v915_v3 }
  0x29   :  { %146 = vmatmul.f32.gmra.mxu0 %v830_v49  ;;  %352 = vmatpush.msra.mxu3 %v335_v21 }
  0x2a   :  { %215 = vmatmul.f32.gmra.mxu1 %v830_v49  ;;  %626 = vmatpush.msrb.mxu2 %v619_v57 }
  0x2b   :  { %288 = vmatmul.f32.gmra.mxu2 %v830_v49  ;;  %416 = vmatpush.msrb.mxu0 %v619_v57  ;;  %v24_v57 = vadd.s32 24, %v1079_v54 }
  0x2c   :  { %627 = vmatpush.msrb.mxu2 %v618_v58  ;;  %487 = vmatpush.msrb.mxu1 %v927_v6 }
  0x2d   :  { %417 = vmatpush.msrb.mxu0 %v618_v58  ;;  %353 = vmatpush.msra.mxu3 %v334_v25  ;;  %v52_v58 = vand.u32 15, %v24_v57 }
  0x2e   :  { %628 = vmatpush.msrb.mxu2 %v617_v60  ;;  %488 = vmatpush.msrb.mxu1 %v939_v9 }
  0x2f   :  { %418 = vmatpush.msrb.mxu0 %v617_v60  ;;  %354 = vmatpush.msra.mxu3 %v333_v30  ;;  %vm1094_vm2 = vcmp.ne.s32.totalorder %v52_v58, 15 }
  0x30   :  { %629 = vmatpush.msrb.mxu2 %v616_v63  ;;  %489 = vmatpush.msrb.mxu1 %v951_v12 }
  0x31   :  { %149 = vmatmul.f32.gmra.mxu0 %v838_v50  ;;  %355 = vmatpush.msra.mxu3 %v332_v33 }
  0x32   :  { %218 = vmatmul.f32.gmra.mxu1 %v838_v50  ;;  %419 = vmatpush.msrb.mxu0 %v616_v63 }
  0x33   :  { %291 = vmatmul.f32.gmra.mxu2 %v838_v50  ;;  %490 = vmatpush.msrb.mxu1 %v967_v17 }
  0x34   :  { %630 = vmatpush.msrb.mxu2 %v615_v2  ;;  %420 = vmatpush.msrb.mxu0 %v615_v2 }
  0x35   :  { %491 = vmatpush.msrb.mxu1 %v979_v20  ;;  %356 = vmatpush.msra.mxu3 %v331_v35  ;;  %v66_v35 = vand.u32 15, %v26_v15 }
  0x36   :  { %631 = vmatpush.msrb.mxu2 %v614_v5  ;;  %421 = vmatpush.msrb.mxu0 %v614_v5 }
  0x37   :  { %492 = vmatpush.msrb.mxu1 %v991_v23  ;;  %357 = vmatpush.msra.mxu3 %v330_v38  ;;  %vm1155_vm7 = vcmp.ne.s32.totalorder %v66_v35, 15 }
  0x38   :  { %632 = vmatpush.msrb.mxu2 %v613_v8  ;;  %422 = vmatpush.msrb.mxu0 %v613_v8 }
  0x39   :  { %152 = vmatmul.f32.gmra.mxu0 %v846_v51  ;;  %493 = vmatpush.msrb.mxu1 %v1005_v27 }
  0x3a   :  { %221 = vmatmul.f32.gmra.mxu1 %v846_v51  ;;  %633 = vmatpush.msrb.mxu2 %v612_v11 }
  0x3b   :  { %294 = vmatmul.f32.gmra.mxu2 %v846_v51  ;;  %423 = vmatpush.msrb.mxu0 %v612_v11  ;;  %v31_v11 = vand.u32 15, %v1079_v54 }
  0x3c   :  { %634 = vmatpush.msrb.mxu2 %v611_v16  ;;  %494 = vmatpush.msrb.mxu1 %v1021_v32 }
  0x3d   :  { %424 = vmatpush.msrb.mxu0 %v611_v16  ;;  %358 = vmatpush.msra.mxu3 %v329_v42  ;;  %vm1125_vm5 = vcmp.ne.s32.totalorder %v31_v11, 0 }
  0x3e   :  { %635 = vmatpush.msrb.mxu2 %v610_v19  ;;  %495 = vmatpush.msrb.mxu1 %v1030_v34 }
  0x3f   :  { %425 = vmatpush.msrb.mxu0 %v610_v19  ;;  %359 = vmatpush.msra.mxu3 %v328_v44 }
  0x40   :  { %636 = vmatpush.msrb.mxu2 %v609_v22  ;;  %496 = vmatpush.msrb.mxu1 %v1039_v36 }
  0x41   :  { %155 = vmatmul.f32.gmra.mxu0 %v854_v52  ;;  %639 = vmatpush.msrb.mxu3 %v891_v61  ;;  %v25_v61 = vadd.s32 32, %v1079_v54 }
  0x42   :  { %224 = vmatmul.f32.gmra.mxu1 %v854_v52  ;;  %426 = vmatpush.msrb.mxu0 %v609_v22 }
  0x43   :  { %297 = vmatmul.f32.gmra.mxu2 %v854_v52  ;;  %497 = vmatpush.msrb.mxu1 %v1050_v39  ;;  %v59_v7 = vand.u32 15, %v25_v61 }
  0x44   :  { %637 = vmatpush.msrb.mxu2 %v608_v26  ;;  %427 = vmatpush.msrb.mxu0 %v608_v26 }
  0x45   :  { %498 = vmatpush.msrb.mxu1 %v1063_v43  ;;  %640 = vmatpush.msrb.mxu3 %v903_v0  ;;  %vm1114_vm3 = vcmp.ne.s32.totalorder %v59_v7, 0 }
  0x46   :  { %638 = vmatpush.msrb.mxu2 %v607_v31  ;;  %428 = vmatpush.msrb.mxu0 %v607_v31 }
  0x47   :  { %499 = vmatpush.msrb.mxu1 %v1072_v45  ;;  %641 = vmatpush.msrb.mxu3 %v915_v3 }
  0x49   :  { %158 = vmatmul.f32.gmra.mxu0 %v862_v53  ;;  %642 = vmatpush.msrb.mxu3 %v927_v6 }
  0x4a   :  { %227 = vmatmul.f32.gmra.mxu1 %v862_v53 }
  0x4b   :  { %300 = vmatmul.f32.gmra.mxu2 %v862_v53  ;;  %643 = vmatpush.msrb.mxu3 %v939_v9 }
  0x4d   :  { %644 = vmatpush.msrb.mxu3 %v951_v12 }
  0x4f   :  { %645 = vmatpush.msrb.mxu3 %v967_v17  ;;  %v38_v17 = vand.u32 15, %v22_v4 }
  0x51   :  { %646 = vmatpush.msrb.mxu3 %v979_v20  ;;  %vm1143_vm6 = vcmp.ne.s32.totalorder %v38_v17, 15 }
  0x53   :  { %647 = vmatpush.msrb.mxu3 %v991_v23 }
  0x55   :  { %648 = vmatpush.msrb.mxu3 %v1005_v27 }
  0x57   :  { %649 = vmatpush.msrb.mxu3 %v1021_v32 }
  0x59   :  { %650 = vmatpush.msrb.mxu3 %v1030_v34 }
  0x5b   :  { %651 = vmatpush.msrb.mxu3 %v1039_v36 }
  0x5d   :  { %652 = vmatpush.msrb.mxu3 %v1050_v39 }
  0x5f   :  { %653 = vmatpush.msrb.mxu3 %v1063_v43 }
  0x61   :  { %654 = vmatpush.msrb.mxu3 %v1072_v45 }
  0x9e   :  { %v953_v13 = vpop.f32.mrf.mxu0 }
  0x9f   :  { %v955_v14 = vpop.f32.mrf.mxu1  ;;  %v231_v16 = vrot.slane %v953_v13, 7 }
  0xa0   :  { %v250_v21 = vrot.slane %v955_v14, 1 }
  0xa6   :  { %v993_v24 = vpop.f32.mrf.mxu2  ;;  %v1007_v28 = vpop.f32.mrf.mxu0 }
  0xa7   :  { %v1009_v29 = vpop.f32.mrf.mxu1  ;;  %v232_v22 = vrot.slane %v1007_v28, 7 }
  0xa8   :  { %v251_v13 = vrot.slane %v1009_v29, 1 }
  0xa9   :  { %v242_v58 = vsel %vm237_vm1, %v231_v16, %v232_v22 }
  0xaa   :  { %v261_v34 = vsel %vm256_vm0, %v250_v21, %v251_v13 }
  0xae   :  { %v1041_v37 = vpop.f32.mrf.mxu2  ;;  %v1052_v40 = vpop.f32.mrf.mxu0 }
  0xaf   :  { %v1054_v41 = vpop.f32.mrf.mxu1  ;;  %v233_v63 = vrot.slane %v1052_v40, 7 }
  0xb0   :  { %v252_v26 = vrot.slane %v1054_v41, 1  ;;  %v23_v41 = vadd.s32 16, %v1079_v54 }
  0xb1   :  { %v241_v39 = vsel %vm237_vm1, %v232_v22, %v233_v63 }
  0xb2   :  { %v260_v46 = vsel %vm256_vm0, %v251_v13, %v252_v26  ;;  %v45_v4 = vand.u32 15, %v23_v41 }
  0xb4   :  { %vm1171_vm10 = vcmp.ne.s32.totalorder %v45_v4, 0 }
  0xb5   :  { %v246_v15 = vsel %vm1171_vm10, %v241_v39, 0.0 }
  0xb6   :  { %v1076_v47 = vpop.f32.mrf.mxu2  ;;  %v153_v55 = vpop.f32.mrf.mxu0 }
  0xb7   :  { %v1081_v56 = vpop.f32.mrf.mxu1  ;;  %v234_v59 = vrot.slane %v153_v55, 7 }
  0xb8   :  { %v253_v1 = vrot.slane %v1081_v56, 1 }
  0xb9   :  { %v240_v5 = vsel %vm237_vm1, %v233_v63, %v234_v59 }
  0xba   :  { %v259_v45 = vsel %vm256_vm0, %v252_v26, %v253_v1 }
  0xbe   :  { %v295_v60 = vpop.f32.mrf.mxu2  ;;  %v156_v62 = vpop.f32.mrf.mxu0 }
  0xbf   :  { %v225_v0 = vpop.f32.mrf.mxu1  ;;  %v235_v6 = vrot.slane %v156_v62, 7  ;;  %v296_v8 = vadd.f32 %v295_v60, %v240_v5 }
  0xc0   :  { %v254_v3 = vrot.slane %v225_v0, 1  ;;  %v290_v0 = vadd.f32 %v1041_v37, %v242_v58 }
  0xc1   :  { %v239_v19 = vsel %vm237_vm1, %v234_v59, %v235_v6 }
  0xc2   :  { %v258_v9 = vsel %vm256_vm0, %v253_v1, %v254_v3  ;;  %v248_v14 = vsel %vm1114_vm3, %v239_v19, 0.0 }
  0xc3   :  { %v266_v10 = vsel %vm1094_vm2, %v258_v9, 0.0 }
  0xc4   :  { %v307_v12 = vadd.f32 %v296_v8, %v266_v10 }
  0xc6   :  { %v298_v20 = vpop.f32.mrf.mxu2  ;;  %v159_v23 = vpop.f32.mrf.mxu0  ;;  %vm313_vm4 = vcmp.gt.f32.partialorder %v307_v12, 0.0  ;;  %v319_v25 = vmul.f32 0.2, %v307_v12 }
  0xc7   :  { %v236_v31 = vrot.slane %v159_v23, 7  ;;  %v228_v33 = vpop.f32.mrf.mxu1  ;;  %v299_v38 = vadd.f32 %v298_v20, %v248_v14 }
  0xc8   :  { %v255_v27 = vrot.slane %v228_v33, 1  ;;  %v1132_v28 = vsel %vm313_vm4, %v307_v12, %v319_v25 }
  0xc9   :  { %v243_v29 = vsel %vm237_vm1, %v236_v31, %v231_v16  ;;  %438 = vmatmul.f32.vlgmr.msrb.gmra.mxu2 %v1132_v28  ;;  %v238_v61 = vsel %vm237_vm1, %v235_v6, %v236_v31  ;;  %v293_v16 = vadd.f32 %v1076_v47, %v246_v15 }
  0xca   :  { %v244_v32 = vsel %vm1125_vm5, %v243_v29, 0.0  ;;  %v257_v42 = vsel %vm256_vm0, %v254_v3, %v255_v27  ;;  %v262_v60 = vsel %vm256_vm0, %v255_v27, %v250_v21  ;;  %v264_v3 = vsel %vm1143_vm6, %v260_v46, 0.0 }
  0xcb   :  { %v287_v55 = vadd.f32 %v993_v24, %v244_v32  ;;  %v308_v57 = vadd.f32 %v299_v38, %v257_v42  ;;  %v268_v7 = vsel %vm1155_vm7, %v262_v60, 0.0  ;;  %v305_v11 = vadd.f32 %v290_v0, %v264_v3 }
  0xcc   :  { %v306_v40 = vadd.f32 %v293_v16, %v259_v45 }
  0xcd   :  { %vm314_vm8 = vcmp.gt.f32.partialorder %v308_v57, 0.0  ;;  %v320_v62 = vmul.f32 0.2, %v308_v57  ;;  %v304_v36 = vadd.f32 %v287_v55, %v261_v34  ;;  %v317_v43 = vmul.f32 0.2, %v305_v11 }
  0xce   :  { %v301_v24 = vpop.f32.mrf.mxu2  ;;  %vm311_vm12 = vcmp.gt.f32.partialorder %v305_v11, 0.0  ;;  %v318_v63 = vmul.f32 0.2, %v306_v40  ;;  %vm312_vm13 = vcmp.gt.f32.partialorder %v306_v40, 0.0 }
  0xcf   :  { %v302_v5 = vadd.f32 %v301_v24, %v238_v61  ;;  %v326_v8 = vsel %vm314_vm8, %v308_v57, %v320_v62  ;;  %vm310_vm9 = vcmp.gt.f32.partialorder %v304_v36, 0.0  ;;  %v316_v9 = vmul.f32 0.2, %v304_v36 }
  0xd0   :  { %v323_v19 = vsel %vm311_vm12, %v305_v11, %v317_v43  ;;  %v324_v20 = vsel %vm312_vm13, %v306_v40, %v318_v63 }
  0xd1   :  { %v309_v6 = vadd.f32 %v302_v5, %v268_v7  ;;  %441 = vmatmul.f32.gmra.mxu2 %v326_v8  ;;  %v322_v10 = vsel %vm310_vm9, %v304_v36, %v316_v9 }
  0xd2   :  { %360 = vmatmul.f32.vlgmr.msra.gmra.mxu3 %v322_v10  ;;  %429 = vmatmul.f32.vlgmr.msrb.gmra.mxu0 %v322_v10 }
  0xd3   :  { %500 = vmatmul.f32.vlgmr.msrb.gmra.mxu1 %v322_v10  ;;  %v321_v12 = vmul.f32 0.2, %v309_v6  ;;  %vm315_vm11 = vcmp.gt.f32.partialorder %v309_v6, 0.0 }
  0xd5   :  { %v327_v17 = vsel %vm315_vm11, %v309_v6, %v321_v12 }
  0xd9   :  { %444 = vmatmul.f32.gmra.mxu2 %v327_v17 }
  0xda   :  { %363 = vmatmul.f32.gmra.mxu3 %v323_v19  ;;  %432 = vmatmul.f32.gmra.mxu0 %v323_v19 }
  0xdb   :  { %503 = vmatmul.f32.gmra.mxu1 %v323_v19 }
  0xe2   :  { %366 = vmatmul.f32.gmra.mxu3 %v324_v20  ;;  %435 = vmatmul.f32.gmra.mxu0 %v324_v20 }
  0xe3   :  { %506 = vmatmul.f32.gmra.mxu1 %v324_v20 }
  0xea   :  { %369 = vmatmul.f32.gmra.mxu3 %v1132_v28 }
  0xf2   :  { %372 = vmatmul.f32.gmra.mxu3 %v326_v8 }
  0xfa   :  { %375 = vmatmul.f32.gmra.mxu3 %v327_v17 }
 0x102   :  { %509 = vmatmul.f32.vlgmr.msrb.gmra.mxu3 %v1132_v28 }
 0x10a   :  { %512 = vmatmul.f32.gmra.mxu3 %v326_v8 }
 0x112   :  { %515 = vmatmul.f32.gmra.mxu3 %v327_v17 }
 0x14c   :  { %v439_v41 = vpop.f32.mrf.mxu2 }
 0x14d   :  { %v469_v57 = vrot.slane %v439_v41, 1 }
 0x14f   :  { %v1188_v47 = vpop.f32.mrf.mxu0 }
 0x150   :  { %v501_v56 = vpop.f32.mrf.mxu1  ;;  %v466_v6 = vrot.slane %v1188_v47, 1 }
 0x154   :  { %v442_v4 = vpop.f32.mrf.mxu2 }
 0x155   :  { %v361_v1 = vpop.f32.mrf.mxu3  ;;  %v470_v8 = vrot.slane %v442_v4, 1 }
 0x156   :  { %v448_v23 = vrot.slane %v361_v1, 7 }
 0x157   :  { %v433_v21 = vpop.f32.mrf.mxu0  ;;  %v473_v12 = vsel %vm256_vm0, %v469_v57, %v470_v8 }
 0x158   :  { %v504_v13 = vpop.f32.mrf.mxu1  ;;  %v467_v31 = vrot.slane %v433_v21, 1  ;;  %v481_v30 = vsel %vm1094_vm2, %v473_v12, 0.0 }
 0x15a   :  { %v476_v37 = vsel %vm256_vm0, %v466_v6, %v467_v31 }
 0x15c   :  { %v445_v40 = vpop.f32.mrf.mxu2 }
 0x15d   :  { %v364_v22 = vpop.f32.mrf.mxu3  ;;  %v471_v1 = vrot.slane %v445_v40, 1 }
 0x15e   :  { %v449_v25 = vrot.slane %v364_v22, 7 }
 0x15f   :  { %v436_v26 = vpop.f32.mrf.mxu0 }
 0x160   :  { %v458_v33 = vsel %vm237_vm1, %v448_v23, %v449_v25  ;;  %v468_v14 = vrot.slane %v436_v26, 1  ;;  %v507_v34 = vpop.f32.mrf.mxu1  ;;  %v477_v26 = vsel %vm256_vm0, %v471_v1, %v466_v6 }
 0x161   :  { %v505_v27 = vadd.f32 %v504_v13, %v458_v33 }
 0x162   :  { %v475_v28 = vsel %vm256_vm0, %v467_v31, %v468_v14  ;;  %v474_v44 = vsel %vm256_vm0, %v468_v14, %v469_v57 }
 0x163   :  { %v479_v35 = vsel %vm1143_vm6, %v475_v28, 0.0  ;;  %v483_v28 = vsel %vm1155_vm7, %v477_v26, 0.0 }
 0x164   :  { %v520_v38 = vadd.f32 %v505_v27, %v479_v35 }
 0x165   :  { %v367_v29 = vpop.f32.mrf.mxu3 }
 0x166   :  { %v526_v32 = vadd.f32 %v520_v38, %v830_v49  ;;  %v450_v42 = vrot.slane %v367_v29, 7 }
 0x168   :  { %vm532_vm14 = vcmp.gt.f32.partialorder %v526_v32, 0.0  ;;  %v538_v46 = vmul.f32 0.2, %v526_v32  ;;  %v457_v55 = vsel %vm237_vm1, %v449_v25, %v450_v42 }
 0x169   :  { %v462_v58 = vsel %vm1171_vm10, %v457_v55, 0.0 }
 0x16a   :  { %v544_v60 = vsel %vm532_vm14, %v526_v32, %v538_v46  ;;  %v508_v61 = vadd.f32 %v507_v34, %v462_v58 }
 0x16b   :  { %550 = vst [vmem:[%s1254_s3 + $0x8] sm:$0xff] %v544_v60 }
 0x16c   :  { %v521_v49 = vadd.f32 %v508_v61, %v474_v44 }
 0x16d   :  { %v370_v24 = vpop.f32.mrf.mxu3 }
 0x16e   :  { %v527_v62 = vadd.f32 %v521_v49, %v838_v50  ;;  %v451_v10 = vrot.slane %v370_v24, 7 }
 0x170   :  { %vm533_vm15 = vcmp.gt.f32.partialorder %v527_v62, 0.0  ;;  %v539_v36 = vmul.f32 0.2, %v527_v62  ;;  %v456_v43 = vsel %vm237_vm1, %v450_v42, %v451_v10 }
 0x172   :  { %v545_v0 = vsel %vm533_vm15, %v527_v62, %v539_v36 }
 0x173   :  { %551 = vst [vmem:[%s1254_s3 + $0x10] sm:$0xff] %v545_v0 }
 0x175   :  { %v373_v3 = vpop.f32.mrf.mxu3 }
 0x176   :  { %v452_v45 = vrot.slane %v373_v3, 7 }
 0x17d   :  { %v376_v5 = vpop.f32.mrf.mxu3 }
 0x17e   :  { %v453_v7 = vrot.slane %v376_v5, 7 }
 0x180   :  { %v459_v9 = vsel %vm237_vm1, %v453_v7, %v448_v23  ;;  %v454_v18 = vsel %vm237_vm1, %v452_v45, %v453_v7 }
 0x181   :  { %v460_v50 = vsel %vm1125_vm5, %v459_v9, 0.0 }
 0x182   :  { %v502_v11 = vadd.f32 %v501_v56, %v460_v50  ;;  %v455_v56 = vsel %vm237_vm1, %v451_v10, %v452_v45 }
 0x183   :  { %v464_v2 = vsel %vm1114_vm3, %v455_v56, 0.0 }
 0x184   :  { %v519_v39 = vadd.f32 %v502_v11, %v476_v37 }
 0x185   :  { %v510_v15 = vpop.f32.mrf.mxu3 }
 0x186   :  { %v525_v16 = vadd.f32 %v519_v39, %v822_v48  ;;  %v511_v17 = vadd.f32 %v510_v15, %v456_v43 }
 0x188   :  { %vm531_vm4 = vcmp.gt.f32.partialorder %v525_v16, 0.0  ;;  %v537_v19 = vmul.f32 0.2, %v525_v16  ;;  %v522_v63 = vadd.f32 %v511_v17, %v481_v30 }
 0x18a   :  { %v543_v20 = vsel %vm531_vm4, %v525_v16, %v537_v19  ;;  %v528_v47 = vadd.f32 %v522_v63, %v846_v51  ;;  %v472_v51 = vsel %vm256_vm0, %v470_v8, %v471_v1 }
 0x18b   :  { %549 = vst [vmem:[%s1254_s3] sm:$0xff] %v543_v20 }
 0x18c   :  { %vm534_vm5 = vcmp.gt.f32.partialorder %v528_v47, 0.0  ;;  %v540_v48 = vmul.f32 0.2, %v528_v47 }
 0x18d   :  { %v513_v21 = vpop.f32.mrf.mxu3 }
 0x18e   :  { %v546_v22 = vsel %vm534_vm5, %v528_v47, %v540_v48  ;;  %v514_v23 = vadd.f32 %v513_v21, %v464_v2 }
 0x18f   :  { %552 = vst [vmem:[%s1254_s3 + $0x18] sm:$0xff] %v546_v22 }
 0x190   :  { %v523_v25 = vadd.f32 %v514_v23, %v472_v51 }
 0x192   :  { %v529_v13 = vadd.f32 %v523_v25, %v854_v52 }
 0x194   :  { %vm535_vm2 = vcmp.gt.f32.partialorder %v529_v13, 0.0  ;;  %v541_v31 = vmul.f32 0.2, %v529_v13 }
 0x195   :  { %v516_v33 = vpop.f32.mrf.mxu3 }
 0x196   :  { %v547_v14 = vsel %vm535_vm2, %v529_v13, %v541_v31  ;;  %v517_v27 = vadd.f32 %v516_v33, %v454_v18 }
 0x197   :  { %553 = vst [vmem:[%s1254_s3 + $0x20] sm:$0xff] %v547_v14 }
 0x198   :  { %v524_v35 = vadd.f32 %v517_v27, %v483_v28 }
 0x19a   :  { %v530_v52 = vadd.f32 %v524_v35, %v862_v53 }
 0x19c   :  { %vm536_vm3 = vcmp.gt.f32.partialorder %v530_v52, 0.0  ;;  %v542_v38 = vmul.f32 0.2, %v530_v52 }
 0x19e   :  { %v548_v29 = vsel %vm536_vm3, %v530_v52, %v542_v38 }
 0x19f   :  { %554 = vst [vmem:[%s1254_s3 + $0x28] sm:$0xff] %v548_v29 }

</bundles_post_ra>
